<compile_context>
chip_gen: v5e
topology: v5e:2x2
jax: 0.10.0
libtpu: 0.0.40
codegen_flags: <defaults>
</compile_context>

<pallas_src>
import functools
import math

import jax
import jax.numpy as jnp
from jax.experimental import pallas as pl
from jax.experimental.pallas import tpu as pltpu

_NEG_BIG = -1e30
_VMEM_LIMIT = 32 * 1024 * 1024


def _pick_tile(dim, pref):
    """Largest convenient tile: full extent if small, else `pref` if it divides."""
    if dim <= pref:
        return dim
    if dim % pref == 0:
        return pref
    return dim


# ----------------------------------------------------------------------------
# RMS LayerNorm kernel
# ----------------------------------------------------------------------------
def _rmsnorm_kernel(x_ref, w_ref, o_ref, *, eps):
    x = x_ref[...].astype(jnp.float32)                      # (tm, D)
    var = jnp.mean(x * x, axis=-1, keepdims=True)
    inv = jax.lax.rsqrt(var + eps)
    y = (x * inv).astype(o_ref.dtype) * w_ref[...]          # torch ordering
    o_ref[...] = y.astype(o_ref.dtype)


def rms_layernorm(x2d, weight, eps):
    M, D = x2d.shape
    tm = _pick_tile(M, 256)
    w2d = weight.reshape(1, D)
    ce = pl.CostEstimate(flops=4 * M * D, transcendentals=M,
                         bytes_accessed=(2 * M * D + D) * 4)
    return pl.pallas_call(
        functools.partial(_rmsnorm_kernel, eps=eps),
        out_shape=jax.ShapeDtypeStruct((M, D), x2d.dtype),
        grid=(M // tm,),
        in_specs=[pl.BlockSpec((tm, D), lambda i: (i, 0)),
                  pl.BlockSpec((1, D), lambda i: (0, 0))],
        out_specs=pl.BlockSpec((tm, D), lambda i: (i, 0)),
        compiler_params=pltpu.CompilerParams(
            dimension_semantics=("parallel",), vmem_limit_bytes=_VMEM_LIMIT),
        cost_estimate=ce,
    )(x2d, w2d)


# ----------------------------------------------------------------------------
# Tiled matmul kernels (projections).  Weights are pre-transposed (K, N) with
# the 1/sqrt(dim_in) scale already folded in.
# ----------------------------------------------------------------------------
def _matmul_kernel(x_ref, w_ref, o_ref, acc_ref):
    @pl.when(pl.program_id(2) == 0)
    def _():
        acc_ref[...] = jnp.zeros_like(acc_ref)

    acc_ref[...] += jnp.dot(x_ref[...], w_ref[...],
                            preferred_element_type=jnp.float32)

    @pl.when(pl.program_id(2) == pl.num_programs(2) - 1)
    def _():
        o_ref[...] = acc_ref[...].astype(o_ref.dtype)


def _matmul_residual_kernel(x_ref, w_ref, r_ref, o_ref, acc_ref, *, out_scale):
    @pl.when(pl.program_id(2) == 0)
    def _():
        acc_ref[...] = jnp.zeros_like(acc_ref)

    acc_ref[...] += jnp.dot(x_ref[...], w_ref[...],
                            preferred_element_type=jnp.float32)

    @pl.when(pl.program_id(2) == pl.num_programs(2) - 1)
    def _():
        res = r_ref[...].astype(jnp.float32)
        o_ref[...] = ((acc_ref[...] + res) * jnp.float32(out_scale)).astype(o_ref.dtype)


def _matmul_grid(M, N, K):
    tm = _pick_tile(M, 256)
    tn = _pick_tile(N, 256)
    tk = _pick_tile(K, 512)
    return tm, tn, tk, (M // tm, N // tn, K // tk)


def linear_matmul(x2d, wT):
    """y = x @ wT   (wT already holds W^T / sqrt(dim_in))."""
    M, K = x2d.shape
    _, N = wT.shape
    tm, tn, tk, grid = _matmul_grid(M, N, K)
    ce = pl.CostEstimate(flops=2 * M * N * K, transcendentals=0,
                         bytes_accessed=(M * K + K * N + M * N) * 4)
    return pl.pallas_call(
        _matmul_kernel,
        out_shape=jax.ShapeDtypeStruct((M, N), x2d.dtype),
        grid=grid,
        in_specs=[pl.BlockSpec((tm, tk), lambda i, j, k: (i, k)),
                  pl.BlockSpec((tk, tn), lambda i, j, k: (k, j))],
        out_specs=pl.BlockSpec((tm, tn), lambda i, j, k: (i, j)),
        scratch_shapes=[pltpu.VMEM((tm, tn), jnp.float32)],
        compiler_params=pltpu.CompilerParams(
            dimension_semantics=("parallel", "parallel", "arbitrary"),
            vmem_limit_bytes=_VMEM_LIMIT),
        cost_estimate=ce,
    )(x2d, wT)


def linear_matmul_residual(x2d, wT, res2d, out_scale):
    """y = (x @ wT + res) * out_scale  — fused output projection + residual."""
    M, K = x2d.shape
    _, N = wT.shape
    tm, tn, tk, grid = _matmul_grid(M, N, K)
    ce = pl.CostEstimate(flops=2 * M * N * K + 2 * M * N, transcendentals=0,
                         bytes_accessed=(M * K + K * N + 2 * M * N) * 4)
    return pl.pallas_call(
        functools.partial(_matmul_residual_kernel, out_scale=out_scale),
        out_shape=jax.ShapeDtypeStruct((M, N), res2d.dtype),
        grid=grid,
        in_specs=[pl.BlockSpec((tm, tk), lambda i, j, k: (i, k)),
                  pl.BlockSpec((tk, tn), lambda i, j, k: (k, j)),
                  pl.BlockSpec((tm, tn), lambda i, j, k: (i, j))],
        out_specs=pl.BlockSpec((tm, tn), lambda i, j, k: (i, j)),
        scratch_shapes=[pltpu.VMEM((tm, tn), jnp.float32)],
        compiler_params=pltpu.CompilerParams(
            dimension_semantics=("parallel", "parallel", "arbitrary"),
            vmem_limit_bytes=_VMEM_LIMIT),
        cost_estimate=ce,
    )(x2d, wT, res2d)


# ----------------------------------------------------------------------------
# Attention kernels
# ----------------------------------------------------------------------------
def _flash_attn_kernel(q_ref, k_ref, v_ref, mask_ref, bias_ref, o_ref,
                       m_sc, l_sc, acc_sc, *, scale, num_heads):
    """Online-softmax attention; no attention-prob output.

    q_ref   : (1, H, qt, Dh)      k_ref/v_ref : (1, H, kt, Dh)
    mask_ref: (1, qt, kt) int8    bias_ref    : (1, H, qt, kt)
    o_ref   : (1, qt, H*Dh)       scratch: m/l (H, qt, 1) f32, acc (H, qt, Dh) f32
    """
    ki = pl.program_id(2)

    @pl.when(ki == 0)
    def _():
        m_sc[...] = jnp.full_like(m_sc, _NEG_BIG)
        l_sc[...] = jnp.zeros_like(l_sc)
        acc_sc[...] = jnp.zeros_like(acc_sc)

    q = q_ref[0]                                   # (H, qt, Dh), input dtype (MXU)
    k = k_ref[0]
    v = v_ref[0]
    bias = bias_ref[0].astype(jnp.float32)         # (H, qt, kt)
    keep = (mask_ref[0].astype(jnp.int32) != 0)[None, :, :]   # (1, qt, kt)

    s = jnp.einsum("hqd,hkd->hqk", q, k, preferred_element_type=jnp.float32)
    s = s * jnp.float32(scale) + bias
    s = jnp.where(keep, s, jnp.float32(_NEG_BIG))

    m_prev = m_sc[...]
    m_new = jnp.maximum(m_prev, jnp.max(s, axis=-1, keepdims=True))
    alpha = jnp.exp(m_prev - m_new)
    p = jnp.exp(s - m_new)
    p = jnp.where(keep, p, jnp.float32(0.0))
    l_sc[...] = alpha * l_sc[...] + jnp.sum(p, axis=-1, keepdims=True)
    acc_sc[...] = alpha * acc_sc[...] + jnp.einsum(
        "hqk,hkd->hqd", p.astype(v.dtype), v, preferred_element_type=jnp.float32)
    m_sc[...] = m_new

    @pl.when(ki == pl.num_programs(2) - 1)
    def _():
        l = l_sc[...]
        inv_l = pl.reciprocal(jnp.where(l == 0.0, jnp.float32(1.0), l), approx=True)
        ctx = acc_sc[...] * inv_l                                    # (H, qt, Dh)
        merged = jnp.concatenate([ctx[h] for h in range(num_heads)], axis=-1)
        o_ref[0] = merged.astype(o_ref.dtype)                        # lane-dense (qt, H*Dh)


def _attn_full_kernel(q_ref, k_ref, v_ref, mask_ref, bias_ref, o_ref, attn_ref,
                      *, scale, num_heads):
    """Full-Lk attention (used only when output_attentions=True)."""
    q = q_ref[0]
    k = k_ref[0]
    v = v_ref[0]
    bias = bias_ref[0].astype(jnp.float32)
    keep = (mask_ref[0].astype(jnp.int32) != 0)[None, :, :]

    s = jnp.einsum("hqd,hkd->hqk", q, k, preferred_element_type=jnp.float32)
    s = s * jnp.float32(scale) + bias
    s = jnp.where(keep, s, jnp.float32(_NEG_BIG))

    m = jnp.max(s, axis=-1, keepdims=True)
    p = jnp.exp(s - m)
    p = jnp.where(keep, p, jnp.float32(0.0))
    l = jnp.sum(p, axis=-1, keepdims=True)
    inv_l = pl.reciprocal(jnp.where(l == 0.0, jnp.float32(1.0), l), approx=True)
    attn = p * inv_l                                                 # (H, qt, Lk)
    attn_ref[0] = attn.astype(attn_ref.dtype)

    ctx = jnp.einsum("hqk,hkd->hqd", attn.astype(v.dtype), v,
                     preferred_element_type=jnp.float32)             # (H, qt, Dh)
    merged = jnp.concatenate([ctx[h] for h in range(num_heads)], axis=-1)
    o_ref[0] = merged.astype(o_ref.dtype)


def attention_core_flash(q, k, v, mask_i8, bias, *, q_tile=128, k_tile=128):
    """q,k,v: (B,H,L,Dh); mask_i8: (B,Lq,Lk) int8; bias: (B,H,Lq,Lk).
    Returns lane-dense context (B, Lq, H*Dh)."""
    B, H, Lq, Dh = q.shape
    Lk = k.shape[2]
    qt = _pick_tile(Lq, q_tile)
    kt = _pick_tile(Lk, k_tile)
    scale = 1.0 / math.sqrt(Dh)
    ce = pl.CostEstimate(flops=4 * B * H * Lq * Lk * Dh,
                         transcendentals=B * H * Lq * Lk,
                         bytes_accessed=(2 * B * H * Lq * Dh + 2 * B * H * Lk * Dh) * 4
                                        + B * Lq * Lk + B * H * Lq * Lk * 4)
    return pl.pallas_call(
        functools.partial(_flash_attn_kernel, scale=scale, num_heads=H),
        out_shape=jax.ShapeDtypeStruct((B, Lq, H * Dh), q.dtype),
        grid=(B, Lq // qt, Lk // kt),
        in_specs=[
            pl.BlockSpec((1, H, qt, Dh), lambda b, qi, ki: (b, 0, qi, 0)),
            pl.BlockSpec((1, H, kt, Dh), lambda b, qi, ki: (b, 0, ki, 0)),
            pl.BlockSpec((1, H, kt, Dh), lambda b, qi, ki: (b, 0, ki, 0)),
            pl.BlockSpec((1, qt, kt), lambda b, qi, ki: (b, qi, ki)),
            pl.BlockSpec((1, H, qt, kt), lambda b, qi, ki: (b, 0, qi, ki)),
        ],
        out_specs=pl.BlockSpec((1, qt, H * Dh), lambda b, qi, ki: (b, qi, 0)),
        scratch_shapes=[pltpu.VMEM((H, qt, 1), jnp.float32),
                        pltpu.VMEM((H, qt, 1), jnp.float32),
                        pltpu.VMEM((H, qt, Dh), jnp.float32)],
        compiler_params=pltpu.CompilerParams(
            dimension_semantics=("parallel", "parallel", "arbitrary"),
            vmem_limit_bytes=_VMEM_LIMIT),
        cost_estimate=ce,
    )(q, k, v, mask_i8, bias)


def attention_core_full(q, k, v, mask_i8, bias, *, q_tile=128):
    """Same as above but also returns attention probabilities (B,H,Lq,Lk)."""
    B, H, Lq, Dh = q.shape
    Lk = k.shape[2]
    qt = _pick_tile(Lq, q_tile)
    scale = 1.0 / math.sqrt(Dh)
    ce = pl.CostEstimate(flops=4 * B * H * Lq * Lk * Dh,
                         transcendentals=B * H * Lq * Lk,
                         bytes_accessed=(2 * B * H * Lq * Dh + 2 * B * H * Lk * Dh) * 4
                                        + B * Lq * Lk + 2 * B * H * Lq * Lk * 4)
    out_shape = (jax.ShapeDtypeStruct((B, Lq, H * Dh), q.dtype),
                 jax.ShapeDtypeStruct((B, H, Lq, Lk), q.dtype))
    return pl.pallas_call(
        functools.partial(_attn_full_kernel, scale=scale, num_heads=H),
        out_shape=out_shape,
        grid=(B, Lq // qt),
        in_specs=[
            pl.BlockSpec((1, H, qt, Dh), lambda b, qi: (b, 0, qi, 0)),
            pl.BlockSpec((1, H, Lk, Dh), lambda b, qi: (b, 0, 0, 0)),
            pl.BlockSpec((1, H, Lk, Dh), lambda b, qi: (b, 0, 0, 0)),
            pl.BlockSpec((1, qt, Lk), lambda b, qi: (b, qi, 0)),
            pl.BlockSpec((1, H, qt, Lk), lambda b, qi: (b, 0, qi, 0)),
        ],
        out_specs=(pl.BlockSpec((1, qt, H * Dh), lambda b, qi: (b, qi, 0)),
                   pl.BlockSpec((1, H, qt, Lk), lambda b, qi: (b, 0, qi, 0))),
        compiler_params=pltpu.CompilerParams(
            dimension_semantics=("parallel", "parallel"),
            vmem_limit_bytes=_VMEM_LIMIT),
        cost_estimate=ce,
    )(q, k, v, mask_i8, bias)


# ----------------------------------------------------------------------------
# Parameter prep + full block forward
# ----------------------------------------------------------------------------
def prepare_params(raw):
    """Pre-transpose projection weights to (dim_in, dim_out) and fold 1/sqrt(dim_in)."""
    def prep(w):  # w: (dim_out, dim_in) torch layout
        dim_in = w.shape[1]
        return (w.T / math.sqrt(dim_in)).astype(w.dtype)
    return {
        "wT_q": prep(raw["w_q"]), "wT_k": prep(raw["w_k"]),
        "wT_v": prep(raw["w_v"]), "wT_o": prep(raw["w_o"]),
        "ln_w": raw["ln_w"],
    }


def cpm_bee_self_attention_block_forward(
    params, hidden_states, attention_mask, position_bias,
    output_attentions=False, past_key_values=None, use_cache=None,
    *, num_heads, dim_head, eps=1e-6,
):
    """Mirror of CpmBeeSelfAttentionBlock.forward (dropout omitted: eval / p=None)."""
    B, L, D = hidden_states.shape
    HD = num_heads * dim_head

    # RMS layernorm (Pallas)
    x_ln = rms_layernorm(hidden_states.reshape(B * L, D), params["ln_w"], eps)

    # projections (tiled Pallas matmuls; weights pre-transposed & pre-scaled)
    q2d = linear_matmul(x_ln, params["wT_q"])
    k2d = linear_matmul(x_ln, params["wT_k"])
    v2d = linear_matmul(x_ln, params["wT_v"])

    q = q2d.reshape(B, L, num_heads, dim_head).transpose(0, 2, 1, 3)
    k = k2d.reshape(B, L, num_heads, dim_head).transpose(0, 2, 1, 3)
    v = v2d.reshape(B, L, num_heads, dim_head).transpose(0, 2, 1, 3)

    if past_key_values is not None:
        k = jnp.concatenate([past_key_values[0], k], axis=-2)
        v = jnp.concatenate([past_key_values[1], v], axis=-2)

    mask_i8 = attention_mask.astype(jnp.int8)   # 4x fewer DMA bytes than f32

    if output_attentions:
        ctx, attn_weights = attention_core_full(q, k, v, mask_i8, position_bias)
    else:
        ctx = attention_core_flash(q, k, v, mask_i8, position_bias)
        attn_weights = None

    # output projection fused with residual add and the /1.05 epilogue
    out2d = linear_matmul_residual(ctx.reshape(B * L, HD), params["wT_o"],
                                   hidden_states.reshape(B * L, D), 1.0 / 1.05)
    out = out2d.reshape(B, L, D)

    pkv = (k, v) if use_cache else None
    return out, attn_weights, pkv


# ----------------------------------------------------------------------------
# Pure-JAX reference (for a correctness sanity check)
# ----------------------------------------------------------------------------
def reference_block(raw, hidden, attention_mask, position_bias, eps, H, Dh):
    B, L, D = hidden.shape
    x = hidden.astype(jnp.float32)
    var = jnp.mean(x * x, axis=-1, keepdims=True)
    ln = (hidden * jax.lax.rsqrt(var + eps)).astype(hidden.dtype) * raw["ln_w"]

    lin = lambda t, w: (t @ w.T) / math.sqrt(w.shape[1])
    q = lin(ln, raw["w_q"]).reshape(B, L, H, Dh).transpose(0, 2, 1, 3)
    k = lin(ln, raw["w_k"]).reshape(B, L, H, Dh).transpose(0, 2, 1, 3)
    v = lin(ln, raw["w_v"]).reshape(B, L, H, Dh).transpose(0, 2, 1, 3)

    score = jnp.einsum("bhqd,bhkd->bhqk", q, k) / math.sqrt(Dh) + position_bias
    mask = attention_mask[:, None, :, :]
    score = jnp.where(mask, score, -jnp.inf)
    probs = jax.nn.softmax(score, axis=-1)
    probs = jnp.where(mask, probs, 0.0)
    ctx = jnp.einsum("bhqk,bhkd->bhqd", probs, v)
    ctx = ctx.transpose(0, 2, 1, 3).reshape(B, L, H * Dh)
    attn_out = lin(ctx, raw["w_o"])
    out = (hidden + attn_out) / 1.05
    return out, probs


# ----------------------------------------------------------------------------
# Main
# ----------------------------------------------------------------------------
if __name__ == "__main__":
    # small config: hidden_size=32, num_attention_heads=4, dim_head=8
    B, L, D, H, Dh = 2, 8, 32, 4, 8
    eps = 1e-6

    key = jax.random.PRNGKey(0)
    ks = jax.random.split(key, 8)

    raw = {
        "w_q": jax.random.normal(ks[0], (H * Dh, D), jnp.float32) * 0.02,
        "w_k": jax.random.normal(ks[1], (H * Dh, D), jnp.float32) * 0.02,
        "w_v": jax.random.normal(ks[2], (H * Dh, D), jnp.float32) * 0.02,
        "w_o": jax.random.normal(ks[3], (D, H * Dh), jnp.float32) * 0.02,
        "ln_w": 1.0 + 0.02 * jax.random.normal(ks[4], (D,), jnp.float32),
    }
    params = prepare_params(raw)

    hidden = jax.random.normal(ks[5], (B, L, D), jnp.float32)
    position_bias = 0.1 * jax.random.normal(ks[6], (B, H, L, L), jnp.float32)
    causal = jnp.tril(jnp.ones((L, L), jnp.bool_))
    attention_mask = jnp.broadcast_to(causal, (B, L, L))

    # path 1: with attention probabilities + cache
    out1, attn_w, pkv = cpm_bee_self_attention_block_forward(
        params, hidden, attention_mask, position_bias,
        output_attentions=True, use_cache=True, num_heads=H, dim_head=Dh, eps=eps)
    out1 = jax.block_until_ready(out1)

    # path 2: flash variant (no attention-prob writeback)
    out2, attn_none, _ = cpm_bee_self_attention_block_forward(
        params, hidden, attention_mask, position_bias,
        output_attentions=False, use_cache=False, num_heads=H, dim_head=Dh, eps=eps)
    out2 = jax.block_until_ready(out2)

    ref_out, ref_attn = reference_block(raw, hidden, attention_mask,
                                        position_bias, eps, H, Dh)

    assert jnp.allclose(out1, ref_out, atol=1e-4, rtol=1e-4), "full-path output mismatch"
    assert jnp.allclose(out2, ref_out, atol=1e-4, rtol=1e-4), "flash-path output mismatch"
    assert jnp.allclose(attn_w, ref_attn, atol=1e-3, rtol=1e-3), "attention probs mismatch"
    assert attn_none is None
    assert pkv[0].shape == (B, H, L, Dh) and pkv[1].shape == (B, H, L, Dh)

    print("KERNEL_OK")
</pallas_src>

<mosaic_0001>
module attributes {stable_mosaic.version = 11 : i64} {
  func.func @_rmsnorm_kernel(%arg0: i32, %arg1: memref<16x32xf32, #tpu.memory_space<vmem>>, %arg2: memref<1x32xf32, #tpu.memory_space<vmem>>, %arg3: memref<16x32xf32, #tpu.memory_space<vmem>>) attributes {dimension_semantics = [#tpu.dimension_semantics<parallel>], iteration_bounds = array<i64: 1>, scalar_prefetch = 0 : i64, scratch_operands = 0 : i64, tpu.core_type = #tpu.core_type<tc>, window_params = [{transform_indices = @transform_0, window_bounds = array<i64: 16, 32>}, {pipeline_mode = #tpu.pipeline_mode<synchronous>, transform_indices = @transform_1, window_bounds = array<i64: 1, 32>}, {transform_indices = @transform_2, window_bounds = array<i64: 16, 32>}]} {
    %c0 = arith.constant 0 : index
    %c0_0 = arith.constant 0 : index
    %0 = vector.load %arg1[%c0, %c0_0] : memref<16x32xf32, #tpu.memory_space<vmem>>, vector<16x32xf32>
    %1 = arith.mulf %0, %0 : vector<16x32xf32>
    %cst = arith.constant dense<0.000000e+00> : vector<16xf32>
    %2 = vector.multi_reduction <add>, %1, %cst [1] : vector<16x32xf32> to vector<16xf32>
    %3 = vector.shape_cast %2 : vector<16xf32> to vector<16x1xf32>
    %cst_1 = arith.constant 3.200000e+01 : f32
    %4 = vector.broadcast %cst_1 : f32 to vector<16x1xf32>
    %5 = arith.divf %3, %4 : vector<16x1xf32>
    %cst_2 = arith.constant 9.99999997E-7 : f32
    %6 = vector.broadcast %cst_2 : f32 to vector<16x1xf32>
    %7 = arith.addf %5, %6 : vector<16x1xf32>
    %8 = math.rsqrt %7 : vector<16x1xf32>
    %9 = vector.broadcast %8 : vector<16x1xf32> to vector<16x32xf32>
    %10 = arith.mulf %0, %9 : vector<16x32xf32>
    %c0_3 = arith.constant 0 : index
    %c0_4 = arith.constant 0 : index
    %11 = vector.load %arg2[%c0_3, %c0_4] : memref<1x32xf32, #tpu.memory_space<vmem>>, vector<1x32xf32>
    %12 = vector.broadcast %11 : vector<1x32xf32> to vector<16x32xf32>
    %13 = arith.mulf %10, %12 : vector<16x32xf32>
    %c0_5 = arith.constant 0 : index
    %c0_6 = arith.constant 0 : index
    %14 = vector.load %arg3[%c0_5, %c0_6] : memref<16x32xf32, #tpu.memory_space<vmem>>, vector<16x32xf32>
    tpu.vector_store %arg3[%c0_5, %c0_6], %13 {strides = array<i32>} : memref<16x32xf32, #tpu.memory_space<vmem>>, vector<16x32xf32>,
    return
  }
  func.func @transform_0(%arg0: i32) -> (i32, i32) {
    %c0_i32 = arith.constant 0 : i32
    %c0_i32_0 = arith.constant 0 : i32
    return %arg0, %c0_i32 : i32, i32
  }
  func.func @transform_1(%arg0: i32) -> (i32, i32) {
    %c0_i32 = arith.constant 0 : i32
    %c0_i32_0 = arith.constant 0 : i32
    %c0_i32_1 = arith.constant 0 : i32
    return %c0_i32, %c0_i32_0 : i32, i32
  }
  func.func @transform_2(%arg0: i32) -> (i32, i32) {
    %c0_i32 = arith.constant 0 : i32
    %c0_i32_0 = arith.constant 0 : i32
    return %arg0, %c0_i32 : i32, i32
  }
}

</mosaic_0001>

<bundles_post_ra>
// kernel: tpu_custom_call.1
= control target key start
LH: loop header
LB: loop body
LE: loop exit
PB: predicated region body
PF: predicated region fallthrough
CT: control target
= control target key end

     0   :  { %7 = vsyncpa [#allocation3], 0  ;;  %s245_s0 = inlined_call_operand.hbm [shape: f32[16,32], index: 0, kind: input, shape index: {}]   ;;  %s246_s1 = inlined_call_operand.hbm [shape: f32[1,32], index: 1, kind: input, shape index: {}]   ;;  %s247_s2 = inlined_call_operand.hbm [shape: f32[16,32], index: 2, kind: output, shape index: {}]  }
   0x1   :  { %8 = vsyncpa [#allocation6], 0 }
   0x2   :  { %9 = vsyncpa [#allocation4], 0  ;;  %s14_s11 = sshll.u32 %s245_s0, 4  ;;  %s205_s12 = smov [#allocation2]   ;;  %s15_s11 = int_to_ptr.hbm [resolvable:$true] %s14_s11 }
   0x3   :  { %s16_s13 = sshll.u32 %s205_s12, 4  ;;  %s28_s16 = sshll.u32 %s246_s1, 4  ;;  %s17_s13 = int_to_ptr.vmem [resolvable:$true] %s16_s13  ;;  %s29_s16 = int_to_ptr.hbm [resolvable:$true] %s28_s16 }
   0x4   :  { %s206_s17 = smov 128   ;;  %s207_s18 = smov 8  }
   0x5   :  { %22 = dma.hbm_to_vmem [thread:$0]  %s15_s11, 256, %s17_s13, [#allocation3], %s206_s17, %s206_s17, %s207_s18  }
   0x6   :  { %s208_s19 = smov [#allocation5]  }
   0x7   :  { %s30_s20 = sshll.u32 %s208_s19, 4  ;;  %s31_s20 = int_to_ptr.vmem [resolvable:$true] %s30_s20 }
   0x8   :  { %33 = dma.hbm_to_vmem [thread:$0]  %s29_s16, 16, %s31_s20, [#allocation6]  }
   0x9   :  { %199 = dma.done.wait [#allocation3], 256  }
   0xa   :  { %200 = vsyncadd [#allocation3], 4294967040 }
   0xb   :  { %201 = dma.done.wait [#allocation6], 16  }
   0xc   :  { %202 = vsyncadd [#allocation6], 4294967280  ;;  %v42_v0 = vld [vmem:[#allocation2] sm:$0xff]  ;;  %vm46_vm0 = vcmask 261120   ;;  %v43_v2 = vld [vmem:[#allocation2 + $0x8] sm:$0xff]  ;;  %v209_v6 = vmov 32.0  }
   0xd   :  { %v44_v1 = vmul.f32 %v42_v0, %v42_v0  ;;  %v45_v4 = vmul.f32 %v43_v2, %v43_v2  ;;  %121 = vrcp.f32 %v209_v6  ;;  %v120_v27 = vld [vmem:[#allocation5] ss:$0 sm:$0xff]  ;;  %s210_s0 = smov [#allocation7]   ;;  %s100_s23 = sshll.u32 %s247_s2, 4  ;;  %s101_s23 = int_to_ptr.hbm [resolvable:$true] %s100_s23 }
   0xe   :  { %s98_s1 = sshll.u32 %s210_s0, 4  ;;  %s99_s1 = int_to_ptr.vmem [resolvable:$true] %s98_s1 }
   0xf   :  { %v47_v3 = vsel %vm46_vm0, %v44_v1, 0.0  ;;  %v50_v5 = vsel %vm46_vm0, %v45_v4, 0.0 }
  0x10   :  { %48 = vadd.xlane.f32.xlu0 %v47_v3 }
  0x13   :  { %v122_v7 = vpop.eup %121 }
  0x14   :  { %v54_v8 = vmul.f32 32.0, %v122_v7  ;;  %vm58_vm1 = vweird.f32 %v122_v7 }
  0x16   :  { %v55_v9 = vsub.f32 1.0, %v54_v8 }
  0x18   :  { %51 = vadd.xlane.f32.xlu0 %v50_v5  ;;  %v56_v10 = vmul.f32 %v122_v7, %v55_v9 }
  0x1a   :  { %v57_v11 = vadd.f32 %v122_v7, %v56_v10 }
  0x1c   :  { %v59_v12 = vsel %vm58_vm1, %v122_v7, %v57_v11 }
  0x83   :  { %v49_v13 = vpop.xlane.xlu0 %48 }
  0x84   :  { %v60_v14 = vmul.f32 %v59_v12, %v49_v13 }
  0x86   :  { %v62_v15 = vadd.f32 1e-06, %v60_v14 }
  0x88   :  { %123 = vrsqrt.f32 %v62_v15  ;;  %vm70_vm3 = vweird.f32 %v62_v15 }
  0x8b   :  { %v52_v16 = vpop.xlane.xlu0 %51 }
  0x8c   :  { %v61_v17 = vmul.f32 %v59_v12, %v52_v16 }
  0x8e   :  { %v124_v18 = vpop.eup %123  ;;  %v63_v19 = vadd.f32 1e-06, %v61_v17 }
  0x8f   :  { %v65_v20 = vmul.f32 %v124_v18, %v62_v15  ;;  %vm71_vm2 = vweird.f32 %v124_v18 }
  0x90   :  { %125 = vrsqrt.f32 %v63_v19  ;;  %vm72_vm4 = vmor %vm70_vm3, %vm71_vm2  ;;  %vm80_vm6 = vweird.f32 %v63_v19 }
  0x91   :  { %v66_v21 = vmul.f32 %v124_v18, %v65_v20 }
  0x93   :  { %v67_v22 = vmul.f32 0.5, %v66_v21 }
  0x95   :  { %v68_v23 = vsub.f32 1.5, %v67_v22 }
  0x96   :  { %v126_v24 = vpop.eup %125 }
  0x97   :  { %v69_v25 = vmul.f32 %v124_v18, %v68_v23  ;;  %v75_v26 = vmul.f32 %v126_v24, %v63_v19  ;;  %vm81_vm5 = vweird.f32 %v126_v24 }
  0x98   :  { %vm82_vm7 = vmor %vm80_vm6, %vm81_vm5 }
  0x99   :  { %v73_v28 = vsel %vm72_vm4, %v124_v18, %v69_v25  ;;  %v76_v29 = vmul.f32 %v126_v24, %v75_v26 }
  0x9a   :  { %v84_v30 = vmul.f32 %v73_v28, %v42_v0 }
  0x9b   :  { %v77_v31 = vmul.f32 0.5, %v76_v29 }
  0x9c   :  { %v90_v32 = vmul.f32 %v120_v27, %v84_v30 }
  0x9d   :  { %v78_v33 = vsub.f32 1.5, %v77_v31 }
  0x9e   :  { %92 = vst.msk [vmem:[#allocation7] sm:$0xff] %vm46_vm0, %v90_v32 }
  0x9f   :  { %v79_v34 = vmul.f32 %v126_v24, %v78_v33 }
  0xa1   :  { %v83_v35 = vsel %vm82_vm7, %v126_v24, %v79_v34 }
  0xa2   :  { %v85_v36 = vmul.f32 %v83_v35, %v43_v2 }
  0xa4   :  { %v91_v37 = vmul.f32 %v120_v27, %v85_v36 }
  0xa6   :  { %93 = vst.msk [vmem:[#allocation7 + $0x8] sm:$0xff] %vm46_vm0, %v91_v37 }
  0xa7   :  { %106 = dma.vmem_to_hbm [thread:$0]  %s99_s1, 256, %s101_s23, [#allocation4], %s206_s17, %s206_s17, %s207_s18  }
  0xa8   :  { %203 = dma.done.wait [#allocation4], 256  }
  0xa9   :  { %204 = vsyncadd [#allocation4], 4294967040 }
  0xaa   :  { %111 = vsyncpa [#allocation3], 1 }
  0xab   :  { %112 = vsyncpa [#allocation6], 1 }
  0xac   :  { %113 = vsyncpa [#allocation4], 1 }

</bundles_post_ra>
